<compile_context>
chip_gen: v5e
topology: v5e:2x2
jax: 0.10.0
libtpu: 0.0.40
codegen_flags: <defaults>
</compile_context>

<pallas_src>
import jax
import jax.numpy as jnp
from jax.experimental import pallas as pl
from jax.experimental.pallas import tpu as pltpu


def _round_up(x, m):
    return ((x + m - 1) // m) * m


_TM_MAX = 512            # max rows per block (single M block for B <= 512)
_TN_MAX = 512            # lane-dense output tile
_VMEM_TILE_BUDGET = 40 << 20   # sized for v7x (64 MiB physical VMEM) w/ headroom


# ----------------------------- kernels --------------------------------------

def _linear_kernel_single_k(x_ref, w_ref, b_ref, o_ref):
    # Whole-K panel resident: one MXU pass, bias added once in f32, cast, store.
    acc = jnp.dot(x_ref[...], w_ref[...], preferred_element_type=jnp.float32)
    o_ref[...] = (acc + b_ref[...].astype(jnp.float32)).astype(o_ref.dtype)


def _linear_kernel_multi_k(x_ref, w_ref, b_ref, o_ref, acc_ref):
    k = pl.program_id(2)

    @pl.when(k == 0)
    def _init():
        acc_ref[...] = jnp.zeros_like(acc_ref)

    acc_ref[...] += jnp.dot(
        x_ref[...], w_ref[...], preferred_element_type=jnp.float32
    )

    @pl.when(k == pl.num_programs(2) - 1)
    def _finalize():
        o_ref[...] = (acc_ref[...] + b_ref[...].astype(jnp.float32)).astype(
            o_ref.dtype
        )


# --------------------------- weight prepare ---------------------------------

def prepare_linear_head(w, b, *, compute_dtype=jnp.bfloat16):
    """One-time weight preprocessing, hoisted out of the forward path.

    w: (out_feats, in_feats)  -- PyTorch nn.Linear layout
    b: (out_feats,)
    """
    w = jnp.asarray(w)
    b = jnp.asarray(b)
    N, K = w.shape
    cbytes = jnp.dtype(compute_dtype).itemsize

    Np = _round_up(N, 128)

    def tiles_fit(tk):
        x_b = 2 * _TM_MAX * tk * cbytes
        w_b = 2 * tk * _TN_MAX * cbytes
        acc_b = _TM_MAX * _TN_MAX * 4
        out_b = 2 * _TM_MAX * _TN_MAX * 4
        return x_b + w_b + acc_b + out_b <= _VMEM_TILE_BUDGET

    if tiles_fit(K):
        tk, Kp = K, K                     # single K step; no K padding needed
    else:
        tk = 128
        for cand in (4096, 2048, 1024, 512, 256, 128):
            if tiles_fit(cand):
                tk = cand
                break
        Kp = _round_up(K, tk)

    # Transpose + cast + pad ONCE (never per forward call).  K pad must be
    # real zeros (feeds the dot); N pad only lands in masked output columns.
    w_t = w.T.astype(compute_dtype)                       # (K, N)
    if (Kp, Np) != (K, N):
        w_t = jnp.pad(w_t, ((0, Kp - K), (0, Np - N)))
    b2 = jnp.pad(b.reshape(1, N).astype(jnp.float32), ((0, 0), (0, Np - N)))

    return dict(w_t=w_t, b=b2, K=K, N=N, Kp=Kp, Np=Np, tk=tk,
                compute_dtype=compute_dtype)


# ------------------------------ forward -------------------------------------

def linear_head_forward(x, params):
    """y = x @ W^T + b, equivalent to nn.Linear(in_feats, out_feats)."""
    w_t, b2 = params["w_t"], params["b"]
    K, N = params["K"], params["N"]
    Kp, Np, tk = params["Kp"], params["Np"], params["tk"]
    cdt = params["compute_dtype"]
    cbytes = jnp.dtype(cdt).itemsize

    out_dtype = x.dtype
    lead = x.shape[:-1]
    assert x.shape[-1] == K, "last dim of x must equal in_feats"
    x2 = x.reshape(-1, K)
    B = x2.shape[0]

    if x2.dtype != cdt:
        x2 = x2.astype(cdt)
    if Kp != K:                                    # multi-K fallback path only
        x2 = jnp.pad(x2, ((0, 0), (0, Kp - K)))    # zeros: padded K adds 0

    sub = 8 if cbytes >= 4 else 16
    Bp = _round_up(B, sub)
    tm = Bp if Bp <= _TM_MAX else 256              # single M block for moderate B

    tn = min(_TN_MAX, Np)
    grid_m = pl.cdiv(B, tm)
    # v7x has 2 TensorCores; keep >= 2 blocks across the parallel axes when we can.
    if grid_m == 1 and Np >= 256 and pl.cdiv(Np, tn) < 2:
        tn = _round_up(pl.cdiv(Np, 2), 128)
    grid_n = pl.cdiv(Np, tn)
    grid_k = Kp // tk
    grid = (grid_m, grid_n, grid_k)
    single_k = grid_k == 1

    # Deeper multibuffering only when per-step MXU work is tiny and K is long.
    n_buf = 3 if (not single_k and tm <= 64 and grid_k >= 4) else 2
    pipe = pl.Buffered(n_buf) if n_buf != 2 else None

    def mk_spec(shape, imap):
        if pipe is None:
            return pl.BlockSpec(shape, imap)
        return pl.BlockSpec(shape, imap, pipeline_mode=pipe)

    in_specs = [
        mk_spec((tm, tk), lambda i, j, k: (i, k)),        # x tile
        mk_spec((tk, tn), lambda i, j, k: (k, j)),        # W^T tile
        pl.BlockSpec((1, tn), lambda i, j, k: (0, j)),    # bias row
    ]
    out_spec = pl.BlockSpec((tm, tn), lambda i, j, k: (i, j))

    obytes = jnp.dtype(out_dtype).itemsize
    vmem_need = (n_buf * tm * tk * cbytes
                 + n_buf * tk * tn * cbytes
                 + 2 * tn * 4
                 + 2 * tm * tn * obytes
                 + (0 if single_k else tm * tn * 4))
    vmem_limit = int(min(max(int(vmem_need * 1.3) + (2 << 20), 32 << 20), 60 << 20))

    cost = pl.CostEstimate(
        flops=2 * B * K * N,
        bytes_accessed=(B * Kp * cbytes + Kp * Np * cbytes + Np * 4
                        + B * N * obytes),
        transcendentals=0,
    )

    kernel = _linear_kernel_single_k if single_k else _linear_kernel_multi_k
    scratch = () if single_k else (pltpu.VMEM((tm, tn), jnp.float32),)

    y = pl.pallas_call(
        kernel,
        out_shape=jax.ShapeDtypeStruct((B, N), out_dtype),
        grid_spec=pltpu.PrefetchScalarGridSpec(
            num_scalar_prefetch=0,
            grid=grid,
            in_specs=in_specs,
            out_specs=out_spec,
            scratch_shapes=scratch,
        ),
        compiler_params=pltpu.CompilerParams(
            dimension_semantics=("parallel", "parallel", "arbitrary"),
            vmem_limit_bytes=vmem_limit,
        ),
        cost_estimate=cost,
    )(x2, w_t, b2)

    return y.reshape(*lead, N)


# ------------------------------- demo ---------------------------------------

if __name__ == "__main__":
    # Small shapes consistent with linear_head(in_feats, out_feats).
    B, in_feats, out_feats = 8, 32, 16

    key = jax.random.PRNGKey(0)
    kx, kw, kb = jax.random.split(key, 3)

    x = jax.random.normal(kx, (B, in_feats), dtype=jnp.float32)
    bound = 1.0 / (in_feats ** 0.5)
    w = jax.random.uniform(kw, (out_feats, in_feats), jnp.float32, -bound, bound)
    b = jax.random.uniform(kb, (out_feats,), jnp.float32, -bound, bound)

    y_ref = x @ w.T + b

    # Default path: bf16 streaming of x / W with f32 MXU accumulation.
    params_bf16 = prepare_linear_head(w, b)
    y = linear_head_forward(x, params_bf16)
    jax.block_until_ready(y)
    assert y.shape == (B, out_feats)
    assert jnp.allclose(y, y_ref, atol=5e-2, rtol=5e-2)

    # f32 streaming path: exact (to fp tolerance) match vs reference.
    params_f32 = prepare_linear_head(w, b, compute_dtype=jnp.float32)
    y32 = linear_head_forward(x, params_f32)
    jax.block_until_ready(y32)
    assert jnp.allclose(y32, y_ref, atol=1e-5, rtol=1e-5)

    # Larger shape: ragged M / N edges, multiple N blocks, panel-resident K.
    B2, K2, N2 = 40, 1600, 1000
    x2 = jax.random.normal(kx, (B2, K2), dtype=jnp.float32)
    w2 = jax.random.normal(kw, (N2, K2), dtype=jnp.float32) / (K2 ** 0.5)
    b2 = jax.random.normal(kb, (N2,), dtype=jnp.float32)
    params2 = prepare_linear_head(w2, b2)
    y2 = linear_head_forward(x2, params2)
    jax.block_until_ready(y2)
    y2_ref = x2 @ w2.T + b2
    assert y2.shape == (B2, N2)
    assert jnp.allclose(y2, y2_ref, atol=1e-1, rtol=1e-1)

    print("KERNEL_OK")
</pallas_src>

<mosaic_0001>
module attributes {stable_mosaic.version = 11 : i64} {
  func.func @_linear_kernel_single_k(%arg0: i32, %arg1: i32, %arg2: i32, %arg3: memref<16x32xbf16, #tpu.memory_space<vmem>>, %arg4: memref<32x128xbf16, #tpu.memory_space<vmem>>, %arg5: memref<1x128xf32, #tpu.memory_space<vmem>>, %arg6: memref<16x128xf32, #tpu.memory_space<vmem>>) attributes {dimension_semantics = [#tpu.dimension_semantics<parallel>, #tpu.dimension_semantics<parallel>, #tpu.dimension_semantics<arbitrary>], iteration_bounds = array<i64: 1, 1, 1>, scalar_prefetch = 0 : i64, scratch_operands = 0 : i64, tpu.core_type = #tpu.core_type<tc>, window_params = [{transform_indices = @transform_0, window_bounds = array<i64: 16, 32>}, {transform_indices = @transform_1, window_bounds = array<i64: 32, 128>}, {transform_indices = @transform_2, window_bounds = array<i64: 1, 128>}, {transform_indices = @transform_3, window_bounds = array<i64: 16, 128>}]} {
    %c0 = arith.constant 0 : index
    %c0_0 = arith.constant 0 : index
    %0 = vector.load %arg3[%c0, %c0_0] : memref<16x32xbf16, #tpu.memory_space<vmem>>, vector<16x32xbf16>
    %c0_1 = arith.constant 0 : index
    %c0_2 = arith.constant 0 : index
    %1 = vector.load %arg4[%c0_1, %c0_2] : memref<32x128xbf16, #tpu.memory_space<vmem>>, vector<32x128xbf16>
    %cst = arith.constant dense<0.000000e+00> : vector<16x128xf32>
    %2 = tpu.matmul %0, %1, %cst {dimension_numbers = #tpu.dot_dimension_numbers<[1], [0], [0], [1], [0, 0, 1, 1], [], []>} : vector<16x32xbf16>, vector<32x128xbf16>, vector<16x128xf32> -> vector<16x128xf32>
    %c0_3 = arith.constant 0 : index
    %c0_4 = arith.constant 0 : index
    %3 = vector.load %arg5[%c0_3, %c0_4] : memref<1x128xf32, #tpu.memory_space<vmem>>, vector<1x128xf32>
    %4 = vector.broadcast %3 : vector<1x128xf32> to vector<16x128xf32>
    %5 = arith.addf %2, %4 : vector<16x128xf32>
    %c0_5 = arith.constant 0 : index
    %c0_6 = arith.constant 0 : index
    %6 = vector.load %arg6[%c0_5, %c0_6] : memref<16x128xf32, #tpu.memory_space<vmem>>, vector<16x128xf32>
    tpu.vector_store %arg6[%c0_5, %c0_6], %5 {strides = array<i32>} : memref<16x128xf32, #tpu.memory_space<vmem>>, vector<16x128xf32>,
    return
  }
  func.func @transform_0(%arg0: i32, %arg1: i32, %arg2: i32) -> (i32, i32) {
    %c0_i32 = arith.constant 0 : i32
    return %arg0, %arg2 : i32, i32
  }
  func.func @transform_1(%arg0: i32, %arg1: i32, %arg2: i32) -> (i32, i32) {
    %c0_i32 = arith.constant 0 : i32
    return %arg2, %arg1 : i32, i32
  }
  func.func @transform_2(%arg0: i32, %arg1: i32, %arg2: i32) -> (i32, i32) {
    %c0_i32 = arith.constant 0 : i32
    %c0_i32_0 = arith.constant 0 : i32
    return %c0_i32, %arg1 : i32, i32
  }
  func.func @transform_3(%arg0: i32, %arg1: i32, %arg2: i32) -> (i32, i32) {
    %c0_i32 = arith.constant 0 : i32
    return %arg0, %arg1 : i32, i32
  }
}

</mosaic_0001>

<bundles_post_ra>
// kernel: tpu_custom_call.1
= control target key start
LH: loop header
LB: loop body
LE: loop exit
PB: predicated region body
PF: predicated region fallthrough
CT: control target
= control target key end

     0   :  { %8 = vsyncpa [#allocation3], 0  ;;  %s256_s0 = inlined_call_operand.hbm [shape: bf16[8,32], index: 0, kind: input, shape index: {}]   ;;  %s257_s1 = inlined_call_operand.hbm [shape: bf16[32,128], index: 1, kind: input, shape index: {}]   ;;  %s258_s2 = inlined_call_operand.vmem [shape: f32[1,128], index: 2, kind: input, shape index: {}]   ;;  %s259_s3 = inlined_call_operand.hbm [shape: f32[8,16], index: 3, kind: output, shape index: {}]  }
   0x1   :  { %9 = vsyncpa [#allocation6], 0 }
   0x2   :  { %10 = vsyncpa [#allocation4], 0 }
   0x3   :  { %14 = vsyncadd [#allocation3], 64  ;;  %s15_s14 = sshll.u32 %s256_s0, 4  ;;  %s217_s15 = smov [#allocation2]   ;;  %s16_s14 = int_to_ptr.hbm [resolvable:$true] %s15_s14 }
   0x4   :  { %s17_s16 = sshll.u32 %s217_s15, 4  ;;  %s28_s19 = sshll.u32 %s257_s1, 4  ;;  %s18_s16 = int_to_ptr.vmem [resolvable:$true] %s17_s16  ;;  %s29_s19 = int_to_ptr.hbm [resolvable:$true] %s28_s19 }
   0x5   :  { %s218_s20 = smov 64   ;;  %s219_s21 = smov 4  }
   0x6   :  { %23 = dma.hbm_to_vmem [thread:$0]  %s16_s14, 64, %s18_s16, [#allocation3], %s218_s20, %s218_s20, %s219_s21  }
   0x7   :  { %s220_s22 = smov [#allocation5]  }
   0x8   :  { %s30_s23 = sshll.u32 %s220_s22, 4  ;;  %s31_s23 = int_to_ptr.vmem [resolvable:$true] %s30_s23 }
   0x9   :  { %36 = dma.hbm_to_vmem [thread:$0]  %s29_s19, 256, %s31_s23, [#allocation6], %s218_s20, %s218_s20, %s219_s21  }
   0xa   :  { %211 = dma.done.wait [#allocation3], 128  }
   0xb   :  { %212 = vsyncadd [#allocation3], 4294967168 }
   0xc   :  { %213 = dma.done.wait [#allocation6], 256  }
   0xd   :  { %214 = vsyncadd [#allocation6], 4294967040  ;;  %v130_v0 = vld [vmem:[#allocation5 + $0x8] sm:$0xff]  ;;  %v129_v1 = vld [vmem:[#allocation5] sm:$0xff]  ;;  %vm75_vm0 = vcmask 261120  }
   0xe   :  { %85 = vmatpush.bf16.msra.mxu0 %v130_v0  ;;  %v128_v2 = vld [vmem:[#allocation2] sm:$0xff] }
   0xf   :  { %v138_v3 = vld [vmem:[%s258_s2] ss:$0 sm:$0xff] }
  0x12   :  { %86 = vmatpush.bf16.msra.mxu0 %v129_v1 }
  0x15   :  { %127 = vmatmul.msk.bf16.vlgmr.msra.gmra.mxu0 %vm75_vm0, %v128_v2 }
  0x92   :  { %v88_v4 = vpop.f32.mrf.mxu0 }
  0x93   :  { %v89_v5 = vadd.f32 %v138_v3, %v88_v4 }
  0x95   :  { %93 = vst [vmem:[#allocation7] sm:$0xff] %v89_v5 }
  0x9a   :  { %v90_v6 = vpop.f32.mrf.mxu0 }
  0x9b   :  { %v91_v7 = vadd.f32 %v138_v3, %v90_v6 }
  0x9d   :  { %94 = vst [vmem:[#allocation7 + $0x8] sm:$0xff] %v91_v7 }
  0x9e   :  { %98 = vsyncadd [#allocation4], 128  ;;  %s101_s26 = sshll.u32 %s259_s3, 4  ;;  %s221_s27 = smov [#allocation7]   ;;  %s102_s26 = int_to_ptr.hbm [resolvable:$true] %s101_s26 }
  0x9f   :  { %s99_s28 = sshll.u32 %s221_s27, 4  ;;  %s222_s29 = smov 128   ;;  %s100_s28 = int_to_ptr.vmem [resolvable:$true] %s99_s28 }
  0xa0   :  { %s223_s30 = smov 8  }
  0xa1   :  { %107 = dma.vmem_to_hbm [thread:$0]  %s100_s28, 128, %s102_s26, [#allocation4], %s222_s29, %s222_s29, %s223_s30  }
  0xa2   :  { %215 = dma.done.wait [#allocation4], 256  }
  0xa3   :  { %216 = vsyncadd [#allocation4], 4294967040 }
  0xa4   :  { %112 = vsyncpa [#allocation3], 1 }
  0xa5   :  { %113 = vsyncpa [#allocation6], 1 }
  0xa6   :  { %114 = vsyncpa [#allocation4], 1 }

</bundles_post_ra>
